<compile_context>
chip_gen: v7x
topology: tpu7x:2x2x1
jax: 0.10.0
libtpu: 0.0.40
codegen_flags: <defaults>
</compile_context>

<pallas_src>
import functools

import jax
import jax.numpy as jnp
from jax import lax
from jax.experimental import pallas as pl
from jax.experimental.pallas import tpu as pltpu

TEMPERATURE = 0.07
NORM_EPS = 1e-12  # F.normalize default eps


def _norm_softmax_loss_kernel(
    v_ref, t_ref, out_ref,
    m_rows_ref, l_rows_ref, m_cols_ref, l_cols_ref, diag_ref,
    *, inv_t, n_total,
):
    i = pl.program_id(0)          # row-tile index (rows of x / rows of v)
    j = pl.program_id(1)          # col-tile index (cols of x / rows of t)
    nrow = pl.num_programs(0)
    ncol = pl.num_programs(1)

    # ---- one-time init of the persistent online-LSE / diag accumulators ----
    @pl.when(jnp.logical_and(i == 0, j == 0))
    def _init():
        m_rows_ref[...] = jnp.full(m_rows_ref.shape, -jnp.inf, jnp.float32)
        l_rows_ref[...] = jnp.zeros(l_rows_ref.shape, jnp.float32)
        m_cols_ref[...] = jnp.full(m_cols_ref.shape, -jnp.inf, jnp.float32)
        l_cols_ref[...] = jnp.zeros(l_cols_ref.shape, jnp.float32)
        diag_ref[...] = jnp.zeros(diag_ref.shape, jnp.float32)

    # ---- normalize this tile's rows (force_fp32); fold 1/T into v ----------
    # TODO(synk): on v6e/v7x one could cast the normalized tiles to bf16 before
    # the MXU (f32 accumulation); kept f32 here to match the f32 reference.
    v = v_ref[...].astype(jnp.float32)                       # [tm, D]
    t = t_ref[...].astype(jnp.float32)                       # [tn, D]
    # F.normalize: x / max(||x||, eps)  ==  x * rsqrt(max(||x||^2, eps^2))
    v_inv = lax.rsqrt(jnp.maximum(jnp.sum(v * v, axis=-1, keepdims=True),
                                  NORM_EPS * NORM_EPS))
    t_inv = lax.rsqrt(jnp.maximum(jnp.sum(t * t, axis=-1, keepdims=True),
                                  NORM_EPS * NORM_EPS))
    v_s = v * (v_inv * inv_t)     # 1/temperature folded into the row scale
    t_n = t * t_inv

    # ---- logits tile: contract last dims of both operands (no t.T copy) ----
    x = lax.dot_general(v_s, t_n,
                        dimension_numbers=(((1,), (1,)), ((), ())),
                        preferred_element_type=jnp.float32)   # [tm, tn]

    # ---- online logsumexp over rows of x (carried across j) ----------------
    m_prev = m_rows_ref[i]                                    # [tm, 1]
    m_new = jnp.maximum(m_prev, jnp.max(x, axis=1, keepdims=True))
    l_rows_ref[i] = (l_rows_ref[i] * jnp.exp(m_prev - m_new)
                     + jnp.sum(jnp.exp(x - m_new), axis=1, keepdims=True))
    m_rows_ref[i] = m_new

    # ---- online logsumexp over cols of x (carried across i) ----------------
    mc_prev = m_cols_ref[j]                                   # [1, tn]
    mc_new = jnp.maximum(mc_prev, jnp.max(x, axis=0, keepdims=True))
    l_cols_ref[j] = (l_cols_ref[j] * jnp.exp(mc_prev - mc_new)
                     + jnp.sum(jnp.exp(x - mc_new), axis=0, keepdims=True))
    m_cols_ref[j] = mc_new

    # ---- diag(x) straight from the tiles (square tiles => only when i == j) -
    @pl.when(i == j)
    def _diag():
        diag_ref[i] = jnp.sum(v_s * t_n, axis=-1, keepdims=True)   # [tm, 1]

    # ---- finalize the scalar loss at the last grid step ---------------------
    @pl.when(jnp.logical_and(i == nrow - 1, j == ncol - 1))
    def _finalize():
        row_lse = jnp.sum(m_rows_ref[...] + jnp.log(l_rows_ref[...]))
        col_lse = jnp.sum(m_cols_ref[...] + jnp.log(l_cols_ref[...]))
        dsum = jnp.sum(diag_ref[...])
        out_ref[0, 0] = (row_lse + col_lse - 2.0 * dsum) / n_total


def _pick_tile(n, preferred=256):
    # 256-multiple tiles keep the v6e/v7x 256x256 MXU full; 128/64/... are
    # still fine on v5e.  Fall back to the full dim for tiny batches.
    for t in (preferred, 128, 64, 32, 16, 8):
        if t <= n and n % t == 0:
            return t
    return n


def norm_softmax_loss(video_embd, text_embd, temperature=TEMPERATURE, tile=None):
    """video_embd, text_embd: [N, D]. Returns scalar float32 loss."""
    n, d = video_embd.shape
    assert text_embd.shape == (n, d)
    if tile is None:
        tile = _pick_tile(n)
    assert n % tile == 0, "batch must be divisible by the tile size"
    nrow = ncol = n // tile   # square tiles: the i == j diag trick relies on it

    kernel = functools.partial(
        _norm_softmax_loss_kernel,
        inv_t=1.0 / temperature,
        n_total=float(n),
    )

    out = pl.pallas_call(
        kernel,
        out_shape=jax.ShapeDtypeStruct((1, 1), jnp.float32),
        grid=(nrow, ncol),
        in_specs=[
            pl.BlockSpec((tile, d), lambda i, j: (i, 0)),   # v row tile
            pl.BlockSpec((tile, d), lambda i, j: (j, 0)),   # t row tile (= x cols)
        ],
        out_specs=pl.BlockSpec((1, 1), lambda i, j: (0, 0),
                               memory_space=pltpu.SMEM),
        scratch_shapes=[
            pltpu.VMEM((nrow, tile, 1), jnp.float32),   # m_rows (online row max)
            pltpu.VMEM((nrow, tile, 1), jnp.float32),   # l_rows (online row sum)
            pltpu.VMEM((ncol, 1, tile), jnp.float32),   # m_cols (online col max)
            pltpu.VMEM((ncol, 1, tile), jnp.float32),   # l_cols (online col sum)
            pltpu.VMEM((nrow, tile, 1), jnp.float32),   # diag(x) per row
        ],
        # Both axes carry online-LSE state -> "arbitrary".
        # TODO(synk): for v7x megacore, restructure column accumulation
        # (per-core partials + reduce) so the row axis can be "parallel".
        compiler_params=pltpu.CompilerParams(
            dimension_semantics=("arbitrary", "arbitrary")),
    )(video_embd, text_embd)
    return out[0, 0]


def _reference(video_embd, text_embd, temperature=TEMPERATURE):
    v = video_embd.astype(jnp.float32)
    t = text_embd.astype(jnp.float32)
    v = v / jnp.maximum(jnp.linalg.norm(v, axis=-1, keepdims=True), NORM_EPS)
    t = t / jnp.maximum(jnp.linalg.norm(t, axis=-1, keepdims=True), NORM_EPS)
    x = (v @ t.T) / temperature
    i_logsm = jax.nn.log_softmax(x, axis=1)
    j_logsm = jax.nn.log_softmax(x.T, axis=1)
    n = x.shape[0]
    return -(jnp.trace(i_logsm) / n) - (jnp.trace(j_logsm) / n)


if __name__ == "__main__":
    key = jax.random.PRNGKey(0)
    k_v, k_t, k_v2, k_t2 = jax.random.split(key, 4)

    # Small paired video/text embedding batch (single-tile path).
    N, D = 8, 32
    video_embd = jax.random.normal(k_v, (N, D), dtype=jnp.float32)
    text_embd = jax.random.normal(k_t, (N, D), dtype=jnp.float32)
    loss = norm_softmax_loss(video_embd, text_embd)
    jax.block_until_ready(loss)
    ref = _reference(video_embd, text_embd)
    assert jnp.allclose(loss, ref, rtol=1e-5, atol=1e-4), (loss, ref)

    # Exercise the tiled online-LSE path with a 4x4 grid of 8x8 logit tiles.
    N2, D2 = 32, 128
    v2 = jax.random.normal(k_v2, (N2, D2), dtype=jnp.float32)
    t2 = jax.random.normal(k_t2, (N2, D2), dtype=jnp.float32)
    loss2 = norm_softmax_loss(v2, t2, tile=8)
    jax.block_until_ready(loss2)
    ref2 = _reference(v2, t2)
    assert jnp.allclose(loss2, ref2, rtol=1e-5, atol=1e-4), (loss2, ref2)

    print("KERNEL_OK")
</pallas_src>

<mosaic_0001>
module attributes {stable_mosaic.version = 11 : i64} {
  func.func @_norm_softmax_loss_kernel(%arg0: i32, %arg1: i32, %arg2: memref<8x32xf32, #tpu.memory_space<vmem>>, %arg3: memref<8x32xf32, #tpu.memory_space<vmem>>, %arg4: memref<1x1xf32, #tpu.memory_space<smem>>, %arg5: memref<1x8x1xf32, #tpu.memory_space<vmem>>, %arg6: memref<1x8x1xf32, #tpu.memory_space<vmem>>, %arg7: memref<1x1x8xf32, #tpu.memory_space<vmem>>, %arg8: memref<1x1x8xf32, #tpu.memory_space<vmem>>, %arg9: memref<1x8x1xf32, #tpu.memory_space<vmem>>) attributes {dimension_semantics = [#tpu.dimension_semantics<arbitrary>, #tpu.dimension_semantics<arbitrary>], iteration_bounds = array<i64: 1, 1>, scalar_prefetch = 0 : i64, scratch_operands = 5 : i64, tpu.core_type = #tpu.core_type<tc>, window_params = [{transform_indices = @transform_0, window_bounds = array<i64: 8, 32>}, {transform_indices = @transform_1, window_bounds = array<i64: 8, 32>}, {transform_indices = @transform_2, window_bounds = array<i64: 1, 1>}]} {
    %c0_i32 = arith.constant 0 : i32
    %0 = arith.cmpi eq, %arg0, %c0_i32 : i32
    %c0_i32_0 = arith.constant 0 : i32
    %1 = arith.cmpi eq, %arg1, %c0_i32_0 : i32
    %2 = arith.andi %0, %1 : i1
    %3 = arith.extui %2 : i1 to i32
    %c0_i32_1 = arith.constant 0 : i32
    %4 = arith.cmpi ne, %3, %c0_i32_1 : i32
    scf.if %4 {
      %cst_34 = arith.constant 0xFF800000 : f32
      %86 = vector.broadcast %cst_34 : f32 to vector<1x8x1xf32>
      %c0_35 = arith.constant 0 : index
      %c0_36 = arith.constant 0 : index
      %c0_37 = arith.constant 0 : index
      %87 = vector.load %arg5[%c0_35, %c0_36, %c0_37] : memref<1x8x1xf32, #tpu.memory_space<vmem>>, vector<1x8x1xf32>
      tpu.vector_store %arg5[%c0_35, %c0_36, %c0_37], %86 {strides = array<i32>} : memref<1x8x1xf32, #tpu.memory_space<vmem>>, vector<1x8x1xf32>,
      %cst_38 = arith.constant 0.000000e+00 : f32
      %88 = vector.broadcast %cst_38 : f32 to vector<1x8x1xf32>
      %c0_39 = arith.constant 0 : index
      %c0_40 = arith.constant 0 : index
      %c0_41 = arith.constant 0 : index
      %89 = vector.load %arg6[%c0_39, %c0_40, %c0_41] : memref<1x8x1xf32, #tpu.memory_space<vmem>>, vector<1x8x1xf32>
      tpu.vector_store %arg6[%c0_39, %c0_40, %c0_41], %88 {strides = array<i32>} : memref<1x8x1xf32, #tpu.memory_space<vmem>>, vector<1x8x1xf32>,
      %cst_42 = arith.constant 0xFF800000 : f32
      %90 = vector.broadcast %cst_42 : f32 to vector<1x1x8xf32>
      %c0_43 = arith.constant 0 : index
      %c0_44 = arith.constant 0 : index
      %c0_45 = arith.constant 0 : index
      %91 = vector.load %arg7[%c0_43, %c0_44, %c0_45] : memref<1x1x8xf32, #tpu.memory_space<vmem>>, vector<1x1x8xf32>
      tpu.vector_store %arg7[%c0_43, %c0_44, %c0_45], %90 {strides = array<i32>} : memref<1x1x8xf32, #tpu.memory_space<vmem>>, vector<1x1x8xf32>,
      %cst_46 = arith.constant 0.000000e+00 : f32
      %92 = vector.broadcast %cst_46 : f32 to vector<1x1x8xf32>
      %c0_47 = arith.constant 0 : index
      %c0_48 = arith.constant 0 : index
      %c0_49 = arith.constant 0 : index
      %93 = vector.load %arg8[%c0_47, %c0_48, %c0_49] : memref<1x1x8xf32, #tpu.memory_space<vmem>>, vector<1x1x8xf32>
      tpu.vector_store %arg8[%c0_47, %c0_48, %c0_49], %92 {strides = array<i32>} : memref<1x1x8xf32, #tpu.memory_space<vmem>>, vector<1x1x8xf32>,
      %cst_50 = arith.constant 0.000000e+00 : f32
      %94 = vector.broadcast %cst_50 : f32 to vector<1x8x1xf32>
      %c0_51 = arith.constant 0 : index
      %c0_52 = arith.constant 0 : index
      %c0_53 = arith.constant 0 : index
      %95 = vector.load %arg9[%c0_51, %c0_52, %c0_53] : memref<1x8x1xf32, #tpu.memory_space<vmem>>, vector<1x8x1xf32>
      tpu.vector_store %arg9[%c0_51, %c0_52, %c0_53], %94 {strides = array<i32>} : memref<1x8x1xf32, #tpu.memory_space<vmem>>, vector<1x8x1xf32>,
    } else {
    }
    %c0 = arith.constant 0 : index
    %c0_2 = arith.constant 0 : index
    %5 = vector.load %arg2[%c0, %c0_2] : memref<8x32xf32, #tpu.memory_space<vmem>>, vector<8x32xf32>
    %c0_3 = arith.constant 0 : index
    %c0_4 = arith.constant 0 : index
    %6 = vector.load %arg3[%c0_3, %c0_4] : memref<8x32xf32, #tpu.memory_space<vmem>>, vector<8x32xf32>
    %7 = arith.mulf %5, %5 : vector<8x32xf32>
    %cst = arith.constant dense<0.000000e+00> : vector<8xf32>
    %8 = vector.multi_reduction <add>, %7, %cst [1] : vector<8x32xf32> to vector<8xf32>
    %9 = vector.shape_cast %8 : vector<8xf32> to vector<8x1xf32>
    %cst_5 = arith.constant 1.000000e-24 : f32
    %10 = vector.broadcast %cst_5 : f32 to vector<8x1xf32>
    %11 = arith.maximumf %9, %10 : vector<8x1xf32>
    %12 = math.rsqrt %11 : vector<8x1xf32>
    %13 = arith.mulf %6, %6 : vector<8x32xf32>
    %cst_6 = arith.constant dense<0.000000e+00> : vector<8xf32>
    %14 = vector.multi_reduction <add>, %13, %cst_6 [1] : vector<8x32xf32> to vector<8xf32>
    %15 = vector.shape_cast %14 : vector<8xf32> to vector<8x1xf32>
    %cst_7 = arith.constant 1.000000e-24 : f32
    %16 = vector.broadcast %cst_7 : f32 to vector<8x1xf32>
    %17 = arith.maximumf %15, %16 : vector<8x1xf32>
    %18 = math.rsqrt %17 : vector<8x1xf32>
    %cst_8 = arith.constant 14.2857141 : f32
    %19 = vector.broadcast %cst_8 : f32 to vector<8x1xf32>
    %20 = arith.mulf %12, %19 : vector<8x1xf32>
    %21 = vector.broadcast %20 : vector<8x1xf32> to vector<8x32xf32>
    %22 = arith.mulf %5, %21 : vector<8x32xf32>
    %23 = vector.broadcast %18 : vector<8x1xf32> to vector<8x32xf32>
    %24 = arith.mulf %6, %23 : vector<8x32xf32>
    %cst_9 = arith.constant dense<0.000000e+00> : vector<8x8xf32>
    %25 = tpu.matmul %22, %24, %cst_9 {dimension_numbers = #tpu.dot_dimension_numbers<[1], [1], [0], [0], [0, 0, 1, 0], [], []>} : vector<8x32xf32>, vector<8x32xf32>, vector<8x8xf32> -> vector<8x8xf32>
    %26 = arith.index_cast %arg0 : i32 to index
    %c0_10 = arith.constant 0 : index
    %c0_11 = arith.constant 0 : index
    %27 = vector.load %arg5[%26, %c0_10, %c0_11] : memref<1x8x1xf32, #tpu.memory_space<vmem>>, vector<1x8x1xf32>
    %28 = vector.shape_cast %27 : vector<1x8x1xf32> to vector<8x1xf32>
    %cst_12 = arith.constant dense<0xFF800000> : vector<8xf32>
    %29 = vector.multi_reduction <maximumf>, %25, %cst_12 [1] : vector<8x8xf32> to vector<8xf32>
    %30 = vector.shape_cast %29 : vector<8xf32> to vector<8x1xf32>
    %31 = arith.maximumf %28, %30 : vector<8x1xf32>
    %32 = arith.index_cast %arg0 : i32 to index
    %c0_13 = arith.constant 0 : index
    %c0_14 = arith.constant 0 : index
    %33 = vector.load %arg6[%32, %c0_13, %c0_14] : memref<1x8x1xf32, #tpu.memory_space<vmem>>, vector<1x8x1xf32>
    %34 = vector.shape_cast %33 : vector<1x8x1xf32> to vector<8x1xf32>
    %35 = arith.subf %28, %31 : vector<8x1xf32>
    %36 = math.exp %35 : vector<8x1xf32>
    %37 = arith.mulf %34, %36 : vector<8x1xf32>
    %38 = vector.broadcast %31 : vector<8x1xf32> to vector<8x8xf32>
    %39 = arith.subf %25, %38 : vector<8x8xf32>
    %40 = math.exp %39 : vector<8x8xf32>
    %cst_15 = arith.constant dense<0.000000e+00> : vector<8xf32>
    %41 = vector.multi_reduction <add>, %40, %cst_15 [1] : vector<8x8xf32> to vector<8xf32>
    %42 = vector.shape_cast %41 : vector<8xf32> to vector<8x1xf32>
    %43 = arith.addf %37, %42 : vector<8x1xf32>
    %44 = arith.index_cast %arg0 : i32 to index
    %c0_16 = arith.constant 0 : index
    %c0_17 = arith.constant 0 : index
    %45 = vector.load %arg6[%44, %c0_16, %c0_17] : memref<1x8x1xf32, #tpu.memory_space<vmem>>, vector<1x8x1xf32>
    %46 = vector.shape_cast %45 : vector<1x8x1xf32> to vector<8x1xf32>
    %47 = vector.shape_cast %43 : vector<8x1xf32> to vector<1x8x1xf32>
    tpu.vector_store %arg6[%44, %c0_16, %c0_17], %47 {strides = array<i32>} : memref<1x8x1xf32, #tpu.memory_space<vmem>>, vector<1x8x1xf32>,
    %48 = arith.index_cast %arg0 : i32 to index
    %c0_18 = arith.constant 0 : index
    %c0_19 = arith.constant 0 : index
    %49 = vector.load %arg5[%48, %c0_18, %c0_19] : memref<1x8x1xf32, #tpu.memory_space<vmem>>, vector<1x8x1xf32>
    %50 = vector.shape_cast %49 : vector<1x8x1xf32> to vector<8x1xf32>
    %51 = vector.shape_cast %31 : vector<8x1xf32> to vector<1x8x1xf32>
    tpu.vector_store %arg5[%48, %c0_18, %c0_19], %51 {strides = array<i32>} : memref<1x8x1xf32, #tpu.memory_space<vmem>>, vector<1x8x1xf32>,
    %52 = arith.index_cast %arg1 : i32 to index
    %c0_20 = arith.constant 0 : index
    %c0_21 = arith.constant 0 : index
    %53 = vector.load %arg7[%52, %c0_20, %c0_21] : memref<1x1x8xf32, #tpu.memory_space<vmem>>, vector<1x1x8xf32>
    %54 = vector.shape_cast %53 : vector<1x1x8xf32> to vector<1x8xf32>
    %cst_22 = arith.constant dense<0xFF800000> : vector<8xf32>
    %55 = vector.multi_reduction <maximumf>, %25, %cst_22 [0] : vector<8x8xf32> to vector<8xf32>
    %56 = vector.shape_cast %55 : vector<8xf32> to vector<1x8xf32>
    %57 = arith.maximumf %54, %56 : vector<1x8xf32>
    %58 = arith.index_cast %arg1 : i32 to index
    %c0_23 = arith.constant 0 : index
    %c0_24 = arith.constant 0 : index
    %59 = vector.load %arg8[%58, %c0_23, %c0_24] : memref<1x1x8xf32, #tpu.memory_space<vmem>>, vector<1x1x8xf32>
    %60 = vector.shape_cast %59 : vector<1x1x8xf32> to vector<1x8xf32>
    %61 = arith.subf %54, %57 : vector<1x8xf32>
    %62 = math.exp %61 : vector<1x8xf32>
    %63 = arith.mulf %60, %62 : vector<1x8xf32>
    %64 = vector.broadcast %57 : vector<1x8xf32> to vector<8x8xf32>
    %65 = arith.subf %25, %64 : vector<8x8xf32>
    %66 = math.exp %65 : vector<8x8xf32>
    %cst_25 = arith.constant dense<0.000000e+00> : vector<8xf32>
    %67 = vector.multi_reduction <add>, %66, %cst_25 [0] : vector<8x8xf32> to vector<8xf32>
    %68 = vector.shape_cast %67 : vector<8xf32> to vector<1x8xf32>
    %69 = arith.addf %63, %68 : vector<1x8xf32>
    %70 = arith.index_cast %arg1 : i32 to index
    %c0_26 = arith.constant 0 : index
    %c0_27 = arith.constant 0 : index
    %71 = vector.load %arg8[%70, %c0_26, %c0_27] : memref<1x1x8xf32, #tpu.memory_space<vmem>>, vector<1x1x8xf32>
    %72 = vector.shape_cast %71 : vector<1x1x8xf32> to vector<1x8xf32>
    %73 = vector.shape_cast %69 : vector<1x8xf32> to vector<1x1x8xf32>
    tpu.vector_store %arg8[%70, %c0_26, %c0_27], %73 {strides = array<i32>} : memref<1x1x8xf32, #tpu.memory_space<vmem>>, vector<1x1x8xf32>,
    %74 = arith.index_cast %arg1 : i32 to index
    %c0_28 = arith.constant 0 : index
    %c0_29 = arith.constant 0 : index
    %75 = vector.load %arg7[%74, %c0_28, %c0_29] : memref<1x1x8xf32, #tpu.memory_space<vmem>>, vector<1x1x8xf32>
    %76 = vector.shape_cast %75 : vector<1x1x8xf32> to vector<1x8xf32>
    %77 = vector.shape_cast %57 : vector<1x8xf32> to vector<1x1x8xf32>
    tpu.vector_store %arg7[%74, %c0_28, %c0_29], %77 {strides = array<i32>} : memref<1x1x8xf32, #tpu.memory_space<vmem>>, vector<1x1x8xf32>,
    %78 = arith.cmpi eq, %arg0, %arg1 : i32
    %79 = arith.extui %78 : i1 to i32
    %c0_i32_30 = arith.constant 0 : i32
    %80 = arith.cmpi ne, %79, %c0_i32_30 : i32
    scf.if %80 {
      %86 = arith.mulf %22, %24 : vector<8x32xf32>
      %cst_34 = arith.constant dense<0.000000e+00> : vector<8xf32>
      %87 = vector.multi_reduction <add>, %86, %cst_34 [1] : vector<8x32xf32> to vector<8xf32>
      %88 = vector.shape_cast %87 : vector<8xf32> to vector<8x1xf32>
      %89 = arith.index_cast %arg0 : i32 to index
      %c0_35 = arith.constant 0 : index
      %c0_36 = arith.constant 0 : index
      %90 = vector.load %arg9[%89, %c0_35, %c0_36] : memref<1x8x1xf32, #tpu.memory_space<vmem>>, vector<1x8x1xf32>
      %91 = vector.shape_cast %90 : vector<1x8x1xf32> to vector<8x1xf32>
      %92 = vector.shape_cast %88 : vector<8x1xf32> to vector<1x8x1xf32>
      tpu.vector_store %arg9[%89, %c0_35, %c0_36], %92 {strides = array<i32>} : memref<1x8x1xf32, #tpu.memory_space<vmem>>, vector<1x8x1xf32>,
    } else {
    }
    %c0_i32_31 = arith.constant 0 : i32
    %81 = arith.cmpi eq, %arg0, %c0_i32_31 : i32
    %c0_i32_32 = arith.constant 0 : i32
    %82 = arith.cmpi eq, %arg1, %c0_i32_32 : i32
    %83 = arith.andi %81, %82 : i1
    %84 = arith.extui %83 : i1 to i32
    %c0_i32_33 = arith.constant 0 : i32
    %85 = arith.cmpi ne, %84, %c0_i32_33 : i32
    scf.if %85 {
      %c0_34 = arith.constant 0 : index
      %c0_35 = arith.constant 0 : index
      %c0_36 = arith.constant 0 : index
      %86 = vector.load %arg5[%c0_34, %c0_35, %c0_36] : memref<1x8x1xf32, #tpu.memory_space<vmem>>, vector<1x8x1xf32>
      %c0_37 = arith.constant 0 : index
      %c0_38 = arith.constant 0 : index
      %c0_39 = arith.constant 0 : index
      %87 = vector.load %arg6[%c0_37, %c0_38, %c0_39] : memref<1x8x1xf32, #tpu.memory_space<vmem>>, vector<1x8x1xf32>
      %88 = math.log %87 : vector<1x8x1xf32>
      %89 = arith.addf %86, %88 : vector<1x8x1xf32>
      %90 = vector.shape_cast %89 : vector<1x8x1xf32> to vector<1x1x8x1xf32>
      %cst_40 = arith.constant dense<0.000000e+00> : vector<1xf32>
      %91 = vector.multi_reduction <add>, %90, %cst_40 [1, 2, 3] : vector<1x1x8x1xf32> to vector<1xf32>
      %92 = vector.shape_cast %91 : vector<1xf32> to vector<1x1x1x1xf32>
      %93 = vector.extract %92[0, 0, 0, 0] : f32 from vector<1x1x1x1xf32>
      %c0_41 = arith.constant 0 : index
      %c0_42 = arith.constant 0 : index
      %c0_43 = arith.constant 0 : index
      %94 = vector.load %arg7[%c0_41, %c0_42, %c0_43] : memref<1x1x8xf32, #tpu.memory_space<vmem>>, vector<1x1x8xf32>
      %c0_44 = arith.constant 0 : index
      %c0_45 = arith.constant 0 : index
      %c0_46 = arith.constant 0 : index
      %95 = vector.load %arg8[%c0_44, %c0_45, %c0_46] : memref<1x1x8xf32, #tpu.memory_space<vmem>>, vector<1x1x8xf32>
      %96 = math.log %95 : vector<1x1x8xf32>
      %97 = arith.addf %94, %96 : vector<1x1x8xf32>
      %98 = vector.shape_cast %97 : vector<1x1x8xf32> to vector<1x1x1x8xf32>
      %cst_47 = arith.constant dense<0.000000e+00> : vector<1xf32>
      %99 = vector.multi_reduction <add>, %98, %cst_47 [1, 2, 3] : vector<1x1x1x8xf32> to vector<1xf32>
      %100 = vector.shape_cast %99 : vector<1xf32> to vector<1x1x1x1xf32>
      %101 = vector.extract %100[0, 0, 0, 0] : f32 from vector<1x1x1x1xf32>
      %c0_48 = arith.constant 0 : index
      %c0_49 = arith.constant 0 : index
      %c0_50 = arith.constant 0 : index
      %102 = vector.load %arg9[%c0_48, %c0_49, %c0_50] : memref<1x8x1xf32, #tpu.memory_space<vmem>>, vector<1x8x1xf32>
      %103 = vector.shape_cast %102 : vector<1x8x1xf32> to vector<1x1x8x1xf32>
      %cst_51 = arith.constant dense<0.000000e+00> : vector<1xf32>
      %104 = vector.multi_reduction <add>, %103, %cst_51 [1, 2, 3] : vector<1x1x8x1xf32> to vector<1xf32>
      %105 = vector.shape_cast %104 : vector<1xf32> to vector<1x1x1x1xf32>
      %106 = vector.extract %105[0, 0, 0, 0] : f32 from vector<1x1x1x1xf32>
      %107 = arith.addf %93, %101 : f32
      %cst_52 = arith.constant 2.000000e+00 : f32
      %108 = arith.mulf %cst_52, %106 : f32
      %109 = arith.subf %107, %108 : f32
      %cst_53 = arith.constant 8.000000e+00 : f32
      %110 = arith.divf %109, %cst_53 : f32
      %c0_54 = arith.constant 0 : index
      %c0_55 = arith.constant 0 : index
      %111 = memref.load %arg4[%c0_54, %c0_55] : memref<1x1xf32, #tpu.memory_space<smem>>
      memref.store %110, %arg4[%c0_54, %c0_55] : memref<1x1xf32, #tpu.memory_space<smem>>
    } else {
    }
    return
  }
  func.func @transform_0(%arg0: i32, %arg1: i32) -> (i32, i32) {
    %c0_i32 = arith.constant 0 : i32
    %c0_i32_0 = arith.constant 0 : i32
    return %arg0, %c0_i32 : i32, i32
  }
  func.func @transform_1(%arg0: i32, %arg1: i32) -> (i32, i32) {
    %c0_i32 = arith.constant 0 : i32
    %c0_i32_0 = arith.constant 0 : i32
    return %arg1, %c0_i32 : i32, i32
  }
  func.func @transform_2(%arg0: i32, %arg1: i32) -> (i32, i32) {
    %c0_i32 = arith.constant 0 : i32
    %c0_i32_0 = arith.constant 0 : i32
    %c0_i32_1 = arith.constant 0 : i32
    return %c0_i32, %c0_i32_0 : i32, i32
  }
}

</mosaic_0001>

<bundles_post_ra>
// kernel: tpu_custom_call.1
= control target key start
LH: loop header
LB: loop body
LE: loop exit
PB: predicated region body
PF: predicated region fallthrough
CT: control target
= control target key end

     0   :  { %7 = vsyncpa [#allocation8], 0  ;;  %s460_s0 = inlined_call_operand.hbm [shape: f32[8,32], index: 0, kind: input, shape index: {}]   ;;  %s461_s1 = inlined_call_operand.hbm [shape: f32[8,32], index: 1, kind: input, shape index: {}]   ;;  %s462_s2 = inlined_call_operand.hbm [shape: f32[1,1], index: 2, kind: output, shape index: {}]  }
   0x1   :  { %8 = vsyncpa [#allocation11], 0 }
   0x2   :  { %9 = vsyncpa [#allocation9], 0  ;;  %s381_s9 = smov [#allocation7]   ;;  %s382_s11 = smov [#allocation10]  }
   0x3   :  { %s16_s10 = sshll.u32 %s381_s9, 4  ;;  %s26_s12 = sshll.u32 %s382_s11, 4  ;;  %s17_s10 = int_to_ptr.vmem [resolvable:$true] %s16_s10  ;;  %s27_s12 = int_to_ptr.vmem [resolvable:$true] %s26_s12 }
   0x4   :  { %s321_s15 = scalar_lea.hbm %s460_s0, 128 }
   0x5   :  { %p322_p0 = scmp.ne.s32.totalorder %s460_s0, %s321_s15  ;;  %p325_p1 = scmp.lt.u32.totalorder %s321_s15, %s460_s0 }
   0x7   :  { %p327_p2 = pnand %p325_p1, %p322_p0 }
   0x9   :  { %330 = shalt.err (!%p327_p2)
}
   0xa   :  { %s331_s20 = scalar_lea.vmem %s17_s10, 128  ;;  %p336_p4 = scmp.lt.s32.totalorder %s17_s10, %s17_s10 }
   0xb   :  { %p332_p3 = scmp.ne.s32.totalorder %s17_s10, %s331_s20  ;;  %p337_p5 = scmp.lt.s32.totalorder %s331_s20, %s331_s20 }
   0xd   :  { %p338_p6 = por %p337_p5, %p336_p4 }
   0xf   :  { %p339_p7 = pnand %p338_p6, %p332_p3 }
  0x11   :  { %342 = shalt.err (!%p339_p7)
}
  0x12   :  { %19 = dma.hbm_to_vmem [thread:$0]  %s460_s0, 128, %s17_s10, [#allocation8]  }
  0x13   :  { %s343_s25 = scalar_lea.hbm %s461_s1, 128 }
  0x14   :  { %p344_p8 = scmp.ne.s32.totalorder %s461_s1, %s343_s25  ;;  %p347_p9 = scmp.lt.u32.totalorder %s343_s25, %s461_s1 }
  0x16   :  { %p349_p10 = pnand %p347_p9, %p344_p8 }
  0x18   :  { %352 = shalt.err (!%p349_p10)
}
  0x19   :  { %s353_s30 = scalar_lea.vmem %s27_s12, 128  ;;  %p358_p12 = scmp.lt.s32.totalorder %s27_s12, %s27_s12 }
  0x1a   :  { %p354_p11 = scmp.ne.s32.totalorder %s27_s12, %s353_s30  ;;  %p359_p13 = scmp.lt.s32.totalorder %s353_s30, %s353_s30 }
  0x1c   :  { %p360_p0 = por %p359_p13, %p358_p12 }
  0x1e   :  { %p361_p1 = pnand %p360_p0, %p354_p11 }
  0x20   :  { %364 = shalt.err (!%p361_p1)
}
  0x21   :  { %29 = dma.hbm_to_vmem [thread:$0]  %s461_s1, 128, %s27_s12, [#allocation11]  }
  0x22   :  { %375 = dma.done.wait [#allocation8], 128  }
  0x23   :  { %376 = vsyncadd [#allocation8], 4294967168 }
  0x24   :  { %377 = dma.done.wait [#allocation11], 128  }
  0x25   :  { %378 = vsyncadd [#allocation11], 4294967168  ;;  %v50_v0 = vld [vmem:[#allocation10] sm:$0xff]  ;;  %vm52_vm0 = vcmask 261120   ;;  %v49_v1 = vld [vmem:[#allocation7] sm:$0xff]  ;;  %v383_v6 = vmov 0.0   ;;  %v186_v22 = vlaneseq }
  0x26   :  { %v58_v2 = vmul.f32 %v50_v0, %v50_v0  ;;  %v51_v3 = vmul.f32 %v49_v1, %v49_v1  ;;  %285 = vmatprep.subr.mxu0 %v383_v6  ;;  %vm42_vm1 = vcmask 7168   ;;  %vm384_vm2 = vmmov 0   ;;  %s365_s12 = scalar_lea.hbm %s462_s2, 16 }
  0x27   :  { %44 = vst.msk [vmem:[#allocation3] sm:$0xff] %vm42_vm1, %v383_v6  ;;  %48 = vst.msk [vmem:[#allocation6] sm:$0xff] %vm42_vm1, %v383_v6  ;;  %287 = vmatprep.mubr.msk.f32.mxu0 %vm384_vm2, %v383_v6  ;;  %vm45_vm3 = vcmask 57344   ;;  %v385_v17 = vmov -inf   ;;  %vm146_vm4 = vcmask 64512   ;;  %v187_v25 = vshrl.u32 %v186_v22, 7  ;;  %p366_p2 = scmp.ne.s32.totalorder %s462_s2, %s365_s12  ;;  %p369_p3 = scmp.lt.u32.totalorder %s365_s12, %s462_s2 }
  0x28   :  { %v59_v4 = vsel %vm52_vm0, %v58_v2, 0.0  ;;  %v53_v5 = vsel %vm52_vm0, %v51_v3, 0.0  ;;  %46 = vst.msk [vmem:[#allocation4] sm:$0x1] %vm45_vm3, %v385_v17  ;;  %47 = vst.msk [vmem:[#allocation5] sm:$0x1] %vm45_vm3, %v383_v6 }
  0x29   :  { %60 = vadd.xlane.f32.xlu0 %v59_v4  ;;  %43 = vst.msk [vmem:[#allocation2] sm:$0xff] %vm42_vm1, %v385_v17  ;;  %v188_v29 = vsub.s32 0, %v187_v25  ;;  %v386_v33 = vmov 0   ;;  %p371_p4 = pnand %p369_p3, %p366_p2 }
  0x2a   :  { %303 = vset.pattern.permute.xlu1 %v386_v33  ;;  %304 = vset.pattern.permute.xlu0 %v386_v33 }
  0x2d   :  { %54 = vadd.xlane.f32.xlu0 %v53_v5 }
  0x2e   :  { %v152_v62 = vld [vmem:[#allocation3] sm:$0xff] }
  0x2f   :  { %v172_v28 = vld [vmem:[#allocation4] sm:$0x1]  ;;  %v180_v45 = vld [vmem:[#allocation5] sm:$0x1] }
  0x30   :  { %v145_v50 = vld [vmem:[#allocation2] sm:$0xff] }
  0xb6   :  { %v61_v7 = vpop.xlane.xlu0 %60 }
  0xb7   :  { %v62_v8 = vmax.f32 %v61_v7, 1e-24 }
  0xb9   :  { %305 = vrsqrt.f32 %v62_v8 }
  0xba   :  { %v55_v9 = vpop.xlane.xlu0 %54 }
  0xbb   :  { %v56_v10 = vmax.f32 %v55_v9, 1e-24 }
  0xbd   :  { %307 = vrsqrt.f32 %v56_v10 }
  0xc3   :  { %v306_v11 = vpop.eup %305 }
  0xc4   :  { %v66_v12 = vmul.f32 %v306_v11, %v50_v0 }
  0xc6   :  { %286 = vmatpush3.xpose.msk.msra.mxu0 %vm52_vm0, %v66_v12 }
  0xc7   :  { %v308_v13 = vpop.eup %307 }
  0xc8   :  { %v64_v14 = vmul.f32 14.285714, %v308_v13 }
  0xca   :  { %v65_v15 = vmul.f32 %v64_v14, %v49_v1 }
  0xcc   :  { %288 = vmatmul.mubr.msk.f32.vlgmr.msra.gmra.mrb[0].mxu0 %vm52_vm0, %v65_v15  ;;  %v209_v16 = vmul.f32 %v66_v12, %v65_v15 }
  0xce   :  { %v210_v59 = vsel %vm52_vm0, %v209_v16, 0.0 }
 0x19f   :  { %v139_v18 = vpop.f32.mrb[0].mxu0 }
 0x1a0   :  { %v289_v19 = vpop.f32.mrb[1].mxu0  ;;  %v147_v20 = vsel %vm146_vm4, %v139_v18, -inf }
 0x1a1   :  { %148 = vmax.xlane.f32.xlu1 %v147_v20  ;;  %v173_v21 = vrot.slane %v147_v20, 4 }
 0x1a3   :  { %v174_v23 = vmax.f32 %v147_v20, %v173_v21 }
 0x1a5   :  { %v175_v24 = vrot.slane %v174_v23, 2 }
 0x1a7   :  { %v176_v26 = vmax.f32 %v174_v23, %v175_v24 }
 0x1a9   :  { %v177_v27 = vrot.slane %v176_v26, 1 }
 0x1ab   :  { %v178_v30 = vmax.f32 %v176_v26, %v177_v27 }
 0x1ad   :  { %v179_v31 = vmax.f32 %v172_v28, %v178_v30 }
 0x1af   :  { %v189_v32 = vrot.slane %v179_v31, %v188_v29  ;;  %204 = vst.msk [vmem:[#allocation4] sm:$0x1] %vm45_vm3, %v179_v31  ;;  %v181_v36 = vsub.f32 %v172_v28, %v179_v31 }
 0x1b1   :  { %v191_v34 = vsub.f32 %v139_v18, %v189_v32  ;;  %v182_v37 = vmul.f32 1.442695, %v181_v36 }
 0x1b3   :  { %v192_v35 = vmul.f32 1.442695, %v191_v34 }
 0x1b5   :  { %309 = vpow2.f32 %v192_v35 }
 0x1b6   :  { %311 = vpow2.f32 %v182_v37  ;;  %v232_v13 = vld [vmem:[#allocation4] sm:$0x1] }
 0x1bf   :  { %v310_v38 = vpop.eup %309 }
 0x1c0   :  { %v194_v39 = vsel %vm146_vm4, %v310_v38, 0.0  ;;  %v312_v44 = vpop.eup %311 }
 0x1c1   :  { %v195_v40 = vrot.slane %v194_v39, 4  ;;  %v184_v48 = vmul.f32 %v312_v44, %v180_v45 }
 0x1c3   :  { %v196_v41 = vadd.f32 %v195_v40, %v194_v39 }
 0x1c5   :  { %v197_v42 = vrot.slane %v196_v41, 2 }
 0x1c7   :  { %v198_v43 = vadd.f32 %v197_v42, %v196_v41 }
 0x1c9   :  { %v199_v46 = vrot.slane %v198_v43, 1 }
 0x1cb   :  { %v200_v47 = vadd.f32 %v199_v46, %v198_v43 }
 0x1cd   :  { %v201_v49 = vadd.f32 %v200_v47, %v184_v48 }
 0x1cf   :  { %203 = vst.msk [vmem:[#allocation5] sm:$0x1] %vm45_vm3, %v201_v49 }
 0x1d6   :  { %v233_v3 = vld [vmem:[#allocation5] sm:$0x1] }
 0x22e   :  { %v149_v51 = vpop.xlane.xlu1 %148 }
 0x22f   :  { %v150_v52 = vmax.f32 %v145_v50, %v149_v51 }
 0x231   :  { %v153_v53 = vsub.f32 %v145_v50, %v150_v52  ;;  %171 = vst.msk [vmem:[#allocation2] sm:$0xff] %vm42_vm1, %v150_v52  ;;  %159 = vperm.xlu1 %303, %v150_v52  }
 0x233   :  { %v154_v60 = vmul.f32 1.442695, %v153_v53 }
 0x238   :  { %v217_v11 = vld [vmem:[#allocation2] sm:$0xff] }
 0x2b0   :  { %v160_v54 = vpop.permute.xlu1 %159 }
 0x2b1   :  { %v162_v55 = vsub.f32 %v139_v18, %v160_v54 }
 0x2b3   :  { %v163_v56 = vmul.f32 1.442695, %v162_v55 }
 0x2b5   :  { %313 = vpow2.f32 %v163_v56 }
 0x2b6   :  { %315 = vpow2.f32 %v154_v60 }
 0x2b7   :  { %317 = vlog2.f32 %v233_v3 }
 0x2bf   :  { %v314_v57 = vpop.eup %313 }
 0x2c0   :  { %v165_v58 = vsel %vm146_vm4, %v314_v57, 0.0  ;;  %v316_v61 = vpop.eup %315 }
 0x2c1   :  { %166 = vadd.xlane.f32.xlu0 %v165_v58  ;;  %v156_v63 = vmul.f32 %v316_v61, %v152_v62  ;;  %v318_v7 = vpop.eup %317 }
 0x2c2   :  { %v235_v10 = vmul.f32 0.6931472, %v318_v7 }
 0x2c4   :  { %v236_v15 = vadd.f32 %v235_v10, %v232_v13 }
 0x2c5   :  { %211 = vadd.xlane.f32.xlu0 %v210_v59 }
 0x2c6   :  { %v237_v16 = vsel %vm45_vm3, %v236_v15, 0.0 }
 0x34e   :  { %v167_v0 = vpop.xlane.xlu0 %166 }
 0x34f   :  { %v168_v1 = vadd.f32 %v167_v0, %v156_v63 }
 0x351   :  { %170 = vst.msk [vmem:[#allocation3] sm:$0xff] %vm42_vm1, %v168_v1 }
 0x352   :  { %v212_v2 = vpop.xlane.xlu0 %211 }
 0x353   :  { %214 = vst.msk [vmem:[#allocation6] sm:$0xff] %vm42_vm1, %v212_v2 }
 0x358   :  { %v218_v4 = vld [vmem:[#allocation3] sm:$0xff] }
 0x359   :  { %319 = vlog2.f32 %v218_v4 }
 0x35a   :  { %v247_v5 = vld [vmem:[#allocation6] sm:$0xff] }
 0x35b   :  { %v248_v6 = vsel %vm42_vm1, %v247_v5, 0.0 }
 0x35c   :  { %249 = vadd.xlane.f32.xlu1 %v248_v6 }
 0x363   :  { %v320_v8 = vpop.eup %319 }
 0x364   :  { %v220_v9 = vmul.f32 0.6931472, %v320_v8 }
 0x366   :  { %v221_v12 = vadd.f32 %v220_v9, %v217_v11 }
 0x368   :  { %v222_v14 = vsel %vm42_vm1, %v221_v12, 0.0 }
 0x369   :  { %223 = vadd.xlane.f32.xlu0 %v222_v14 }
 0x36d   :  { %238 = vadd.xlane.f32.xlu0 %v237_v16 }
 0x3e9   :  { %v250_v17 = vpop.xlane.xlu1 %249 }
 0x3ea   :  { %v251_v18 = vrot.slane %v250_v17, 4 }
 0x3ec   :  { %v252_v19 = vadd.f32 %v251_v18, %v250_v17 }
 0x3ee   :  { %v253_v23 = vrot.slane %v252_v19, 2 }
 0x3f0   :  { %v254_v29 = vadd.f32 %v253_v23, %v252_v19 }
 0x3f2   :  { %v255_v34 = vrot.slane %v254_v29, 1 }
 0x3f4   :  { %v256_v37 = vadd.f32 %v255_v34, %v254_v29 }
 0x3f6   :  { %v224_v20 = vpop.xlane.xlu0 %223 }
 0x3f7   :  { %v225_v21 = vrot.slane %v224_v20, 4 }
 0x3f9   :  { %v226_v22 = vadd.f32 %v225_v21, %v224_v20 }
 0x3fa   :  { %v239_v24 = vpop.xlane.xlu0 %238 }
 0x3fb   :  { %v227_v25 = vrot.slane %v226_v22, 2  ;;  %v240_v26 = vrot.slane %v239_v24, 4 }
 0x3fd   :  { %v241_v27 = vadd.f32 %v240_v26, %v239_v24  ;;  %v228_v28 = vadd.f32 %v227_v25, %v226_v22 }
 0x3ff   :  { %v242_v30 = vrot.slane %v241_v27, 2  ;;  %v229_v31 = vrot.slane %v228_v28, 1 }
 0x401   :  { %v243_v32 = vadd.f32 %v242_v30, %v241_v27  ;;  %v230_v33 = vadd.f32 %v229_v31, %v228_v28 }
 0x403   :  { %290 = vpush %v230_v33  ;;  %v244_v35 = vrot.slane %v243_v32, 1 }
 0x405   :  { %v245_v36 = vadd.f32 %v244_v35, %v243_v32 }
 0x407   :  { %292 = vpush %v245_v36 }
 0x408   :  { %294 = vpush %v256_v37 }
 0x434   :  { %s291_s1 = spop %290 }
 0x438   :  { %s293_s4 = spop %292 }
 0x439   :  { %s258_s5 = sadd.f32 %s293_s4, %s291_s1  ;;  %s295_s6 = spop %294 }
 0x43a   :  { %s259_s7 = smul.f32 2.0, %s295_s6 }
 0x43c   :  { %s260_s8 = ssub.f32 %s258_s5, %s259_s7 }
 0x43e   :  { %s263_s9 = smul.f32 0.125, %s260_s8 }
 0x440   :  { %265 = sst [smem:[#allocation12]] %s263_s9 }
 0x441   :  { %374 = shalt.err (!%p371_p4)
}
 0x442   :  { %s387_s17 = smov [#allocation12]  }
 0x443   :  { %273 = dma.smem_to_hbm %s387_s17, 16, %s462_s2, [#allocation9]  }
 0x444   :  { %379 = dma.done.wait [#allocation9], 16  }
 0x445   :  { %380 = vsyncadd [#allocation9], 4294967280 }
 0x446   :  { %277 = sfence }
 0x447   :  { %278 = vsyncpa [#allocation8], 1 }
 0x448   :  { %279 = vsyncpa [#allocation11], 1 }
 0x449   :  { %280 = vsyncpa [#allocation9], 1 }

</bundles_post_ra>
